<compile_context>
chip_gen: v7x
topology: tpu7x:2x2x1
jax: 0.10.0
libtpu: 0.0.40
codegen_flags: <defaults>
</compile_context>

<pallas_src>
import math
import functools

import jax
import jax.numpy as jnp
from jax.experimental import pallas as pl
from jax.experimental.pallas import tpu as pltpu


# ---------------------------------------------------------------------------
# Generation-aware VMEM budget and tile ceilings
# ---------------------------------------------------------------------------

def _vmem_capacity_bytes():
    try:
        cap = int(getattr(pltpu.get_tpu_info(), "vmem_capacity_bytes", 0))
        if cap > 0:
            return cap
    except Exception:
        pass
    return 64 * 1024 * 1024  # conservative fallback (v7x per-TC VMEM)


_VMEM_CAPACITY = _vmem_capacity_bytes()
# Leave ~35% headroom for compiler scratch / pipeline buffers.
_VMEM_LIMIT_BYTES = min(int(_VMEM_CAPACITY * 0.65), 96 * 1024 * 1024)

# v5e/v6e (128 MiB VMEM): larger M/K tiles raise arithmetic intensity.
# v7x (64 MiB VMEM, 3.2 TB/s HBM): keep the smaller ceilings.
if _VMEM_CAPACITY >= 100 * 1024 * 1024:
    _TM_CAP, _TN_CAP, _TK_CAP = 1024, 1024, 1024
else:
    _TM_CAP, _TN_CAP, _TK_CAP = 512, 1024, 512


# ---------------------------------------------------------------------------
# Kernels
# ---------------------------------------------------------------------------

def _maybe_cast(a, b, cast_dtype):
    if cast_dtype is not None:
        a = a.astype(cast_dtype)
        b = b.astype(cast_dtype)
    return a, b


def _matmul_kernel_single_block(x_ref, w_ref, o_ref, *, cast_dtype=None):
    """Whole problem fits in VMEM: one MXU pass, no grid/pipeline overhead."""
    a, b = _maybe_cast(x_ref[...], w_ref[...], cast_dtype)
    o_ref[...] = jnp.dot(
        a, b, preferred_element_type=jnp.float32
    ).astype(o_ref.dtype)


def _matmul_kernel_acc_out(x_ref, w_ref, o_ref, *, cast_dtype=None):
    """f32 output: accumulate directly into the VMEM-resident output block
    (the out BlockSpec returns the same (i, j) block across the K axis)."""
    @pl.when(pl.program_id(2) == 0)
    def _():
        o_ref[...] = jnp.zeros_like(o_ref)

    a, b = _maybe_cast(x_ref[...], w_ref[...], cast_dtype)
    o_ref[...] += jnp.dot(a, b, preferred_element_type=jnp.float32)


def _matmul_kernel_acc_scratch(x_ref, w_ref, o_ref, acc_ref, *, cast_dtype=None):
    """Non-f32 output: accumulate in f32 VMEM scratch, cast on last K step."""
    @pl.when(pl.program_id(2) == 0)
    def _():
        acc_ref[...] = jnp.zeros_like(acc_ref)

    a, b = _maybe_cast(x_ref[...], w_ref[...], cast_dtype)
    acc_ref[...] += jnp.dot(a, b, preferred_element_type=jnp.float32)

    @pl.when(pl.program_id(2) == pl.num_programs(2) - 1)
    def _():
        o_ref[...] = acc_ref[...].astype(o_ref.dtype)


# ---------------------------------------------------------------------------
# Tile selection helpers
# ---------------------------------------------------------------------------

def _round_up(x, m):
    return ((x + m - 1) // m) * m


def _sublane_align(*dtypes):
    """Sublane alignment for the narrowest dtype involved (8 f32 / 16 bf16 / 32 int8)."""
    align = 8
    for dt in dtypes:
        itemsize = jnp.dtype(dt).itemsize
        align = max(align, {4: 8, 2: 16, 1: 32}.get(itemsize, 8))
    return align


def _choose_tile(dim, align, cap):
    """Prefer padding-free tiles: full dim if it fits, else the largest
    aligned exact divisor <= cap; only fall back to an aligned cap (which
    requires wrapper-side padding) for pathological dims."""
    if dim <= cap:
        return dim  # block == full dim: always legal, never padded
    t = (cap // align) * align
    while t >= align:
        if dim % t == 0:
            return t
        t -= align
    return (cap // align) * align  # rare fallback: padding required


def _sanitize_tile(tile, dim, align):
    """Clamp a tile to the dim (full-dim blocks are always legal) and keep
    sub-dim blocks aligned."""
    tile = min(tile, dim)
    if tile != dim and tile % align != 0:
        tile = min(_round_up(tile, align), dim)
    return tile


# ---------------------------------------------------------------------------
# Wrapper
# ---------------------------------------------------------------------------

@functools.partial(jax.jit, static_argnames=("tm", "tn", "tk", "operand_dtype"))
def matrix_multiplication(x, w, *, tm=None, tn=None, tk=None, operand_dtype=None):
    """Pallas TPU equivalent of torch.einsum('bx,xy->by', x, w).

    operand_dtype: optional dtype (e.g. jnp.bfloat16) to cast operands to
    inside the kernel while keeping f32 accumulation (opt-in, changes numerics).
    """
    M, K = x.shape
    K2, N = w.shape
    if K != K2:
        raise ValueError("in_features mismatch")
    out_dtype = jnp.result_type(x.dtype, w.dtype)
    cast_dtype = None if operand_dtype is None else jnp.dtype(operand_dtype)

    user_tiles = not (tm is None and tn is None and tk is None)

    # Fast path only for genuinely tiny problems (gridless single-TC call,
    # no compute/DMA overlap, so keep it small — latency win only).
    flops = 2 * M * N * K
    vmem_est = (M * K * x.dtype.itemsize
                + K * N * w.dtype.itemsize
                + M * N * jnp.dtype(out_dtype).itemsize)
    if not user_tiles and flops <= (1 << 24) and vmem_est <= (2 << 20):
        kernel = functools.partial(_matmul_kernel_single_block,
                                   cast_dtype=cast_dtype)
        return pl.pallas_call(
            kernel,
            out_shape=jax.ShapeDtypeStruct((M, N), out_dtype),
            compiler_params=pltpu.CompilerParams(
                vmem_limit_bytes=_VMEM_LIMIT_BYTES
            ),
        )(x, w)

    # --- Tile selection -----------------------------------------------------
    m_align = _sublane_align(x.dtype, out_dtype)   # sublane of x and out blocks
    tm = _choose_tile(M, m_align, _TM_CAP) if tm is None else _sanitize_tile(tm, M, m_align)
    tn = _choose_tile(N, 128, _TN_CAP) if tn is None else _sanitize_tile(tn, N, 128)
    tk = _choose_tile(K, 128, _TK_CAP) if tk is None else _sanitize_tile(tk, K, 128)

    # Megacore (v7x has 2 TCs sharded over 'parallel' axes): if both parallel
    # axes would have a single block, split N (preferred) or M in two exact
    # halves. Negligible cost on single-core parts.
    if not user_tiles and M <= tm and N <= tn:
        if N >= 256 and N % 2 == 0 and (N // 2) % 128 == 0:
            tn = N // 2
        elif M >= 2 * m_align and M % 2 == 0 and (M // 2) % m_align == 0:
            tm = M // 2

    # --- Padding: rare fallback only (tiles usually divide exactly) ---------
    Mp, Np, Kp = _round_up(M, tm), _round_up(N, tn), _round_up(K, tk)
    xp = x if (Mp == M and Kp == K) else jnp.pad(x, ((0, Mp - M), (0, Kp - K)))
    # Re-materializing the weight is expensive; only happens when K or N has
    # no aligned exact-divisor tile (pathological shapes).
    wp = w if (Kp == K and Np == N) else jnp.pad(w, ((0, Kp - K), (0, Np - N)))

    grid = (Mp // tm, Np // tn, Kp // tk)

    if out_dtype == jnp.float32:
        kernel = functools.partial(_matmul_kernel_acc_out, cast_dtype=cast_dtype)
        scratch_shapes = []
    else:
        kernel = functools.partial(_matmul_kernel_acc_scratch, cast_dtype=cast_dtype)
        scratch_shapes = [pltpu.VMEM((tm, tn), jnp.float32)]

    out = pl.pallas_call(
        kernel,
        out_shape=jax.ShapeDtypeStruct((Mp, Np), out_dtype),
        grid_spec=pltpu.PrefetchScalarGridSpec(
            num_scalar_prefetch=0,
            grid=grid,
            in_specs=[
                pl.BlockSpec((tm, tk), lambda i, j, k: (i, k)),
                pl.BlockSpec((tk, tn), lambda i, j, k: (k, j)),
            ],
            out_specs=pl.BlockSpec((tm, tn), lambda i, j, k: (i, j)),
            scratch_shapes=scratch_shapes,
        ),
        compiler_params=pltpu.CompilerParams(
            dimension_semantics=("parallel", "parallel", "arbitrary"),
            vmem_limit_bytes=_VMEM_LIMIT_BYTES,
        ),
    )(xp, wp)

    if (Mp, Np) != (M, N):
        out = out[:M, :N]
    return out


def init_weight(key, in_features, out_features, dtype=jnp.float32):
    """Matches nn.init.kaiming_uniform_(weight, a=sqrt(5)) applied literally to
    an (in_features, out_features) tensor: PyTorch uses fan_in = tensor.size(1),
    i.e. out_features here (intentionally mirrors the module as written)."""
    a = math.sqrt(5.0)
    fan_in = out_features
    gain = math.sqrt(2.0 / (1.0 + a * a))
    bound = gain * math.sqrt(3.0 / fan_in)
    return jax.random.uniform(
        key, (in_features, out_features), dtype=dtype, minval=-bound, maxval=bound
    )


if __name__ == "__main__":
    key = jax.random.PRNGKey(0)
    k1, k2, k3, k4 = jax.random.split(key, 4)

    # Small shape implied by the module -> single-block fast path.
    B, IN_F, OUT_F = 8, 32, 128
    x = jax.random.normal(k1, (B, IN_F), dtype=jnp.float32)
    w = init_weight(k2, IN_F, OUT_F)
    out = jax.block_until_ready(matrix_multiplication(x, w))
    ref = jnp.einsum("bx,xy->by", x, w)
    assert out.shape == (B, OUT_F)
    assert jnp.allclose(out, ref, atol=1e-5, rtol=1e-5)

    # Larger shape exercising the tiled path: grid (1, 2, 3), K-reduction over
    # 3 steps, 2 parallel N blocks, no padding anywhere (tiles divide exactly).
    B2, IN_F2, OUT_F2 = 200, 384, 512
    x2 = jax.random.normal(k3, (B2, IN_F2), dtype=jnp.float32)
    w2 = init_weight(k4, IN_F2, OUT_F2)
    out2 = jax.block_until_ready(matrix_multiplication(x2, w2, tn=256, tk=128))
    ref2 = jnp.einsum("bx,xy->by", x2, w2)
    assert out2.shape == (B2, OUT_F2)
    assert jnp.allclose(out2, ref2, atol=1e-4, rtol=1e-4)

    # Default (auto) tiles on the same shape: full-dim tiles + megacore N split.
    out3 = jax.block_until_ready(matrix_multiplication(x2, w2))
    assert jnp.allclose(out3, ref2, atol=1e-4, rtol=1e-4)

    # Opt-in bf16-operand mode (f32 accumulation) — looser tolerance.
    out4 = jax.block_until_ready(
        matrix_multiplication(x2, w2, operand_dtype=jnp.bfloat16)
    )
    assert jnp.allclose(out4, ref2, atol=1e-1, rtol=1e-1)

    print("KERNEL_OK")
</pallas_src>

<mosaic_0001>
module attributes {stable_mosaic.version = 11 : i64} {
  func.func @_matmul_kernel_single_block(%arg0: memref<8x32xf32, #tpu.memory_space<vmem>>, %arg1: memref<32x128xf32, #tpu.memory_space<vmem>>, %arg2: memref<8x128xf32, #tpu.memory_space<vmem>>) attributes {dimension_semantics = [], scalar_prefetch = 0 : i64, scratch_operands = 0 : i64, tpu.core_type = #tpu.core_type<tc>} {
    %c0 = arith.constant 0 : index
    %c0_0 = arith.constant 0 : index
    %0 = vector.load %arg0[%c0, %c0_0] : memref<8x32xf32, #tpu.memory_space<vmem>>, vector<8x32xf32>
    %c0_1 = arith.constant 0 : index
    %c0_2 = arith.constant 0 : index
    %1 = vector.load %arg1[%c0_1, %c0_2] : memref<32x128xf32, #tpu.memory_space<vmem>>, vector<32x128xf32>
    %cst = arith.constant dense<0.000000e+00> : vector<8x128xf32>
    %2 = tpu.matmul %0, %1, %cst {dimension_numbers = #tpu.dot_dimension_numbers<[1], [0], [0], [1], [0, 0, 1, 1], [], []>} : vector<8x32xf32>, vector<32x128xf32>, vector<8x128xf32> -> vector<8x128xf32>
    %c0_3 = arith.constant 0 : index
    %c0_4 = arith.constant 0 : index
    %3 = vector.load %arg2[%c0_3, %c0_4] : memref<8x128xf32, #tpu.memory_space<vmem>>, vector<8x128xf32>
    tpu.vector_store %arg2[%c0_3, %c0_4], %2 {strides = array<i32>} : memref<8x128xf32, #tpu.memory_space<vmem>>, vector<8x128xf32>,
    return
  }
}

</mosaic_0001>

<bundles_post_ra>
// kernel: matrix_multiplication.1
= control target key start
LH: loop header
LB: loop body
LE: loop exit
PB: predicated region body
PF: predicated region fallthrough
CT: control target
= control target key end

     0   :  { %7 = vsyncpa [#allocation3], 0  ;;  %s303_s0 = inlined_call_operand.hbm [shape: f32[8,32], index: 0, kind: input, shape index: {}]   ;;  %s304_s1 = inlined_call_operand.hbm [shape: f32[32,128], index: 1, kind: input, shape index: {}]   ;;  %s305_s2 = inlined_call_operand.hbm [shape: f32[8,128], index: 2, kind: output, shape index: {}]  }
   0x1   :  { %8 = vsyncpa [#allocation6], 0 }
   0x2   :  { %9 = vsyncpa [#allocation4], 0  ;;  %s237_s9 = smov [#allocation2]   ;;  %s238_s11 = smov [#allocation5]  }
   0x3   :  { %s16_s10 = sshll.u32 %s237_s9, 4  ;;  %s25_s12 = sshll.u32 %s238_s11, 4  ;;  %s17_s10 = int_to_ptr.vmem [resolvable:$true] %s16_s10  ;;  %s260_s12 = int_to_ptr.vmem [resolvable:$true] %s25_s12 }
   0x4   :  { %s165_s15 = scalar_lea.hbm %s303_s0, 128 }
   0x5   :  { %p166_p0 = scmp.ne.s32.totalorder %s303_s0, %s165_s15  ;;  %p169_p1 = scmp.lt.u32.totalorder %s165_s15, %s303_s0 }
   0x7   :  { %p171_p2 = pnand %p169_p1, %p166_p0 }
   0x9   :  { %174 = shalt.err (!%p171_p2)
}
   0xa   :  { %s175_s20 = scalar_lea.vmem %s17_s10, 128  ;;  %p180_p4 = scmp.lt.s32.totalorder %s17_s10, %s17_s10 }
   0xb   :  { %p176_p3 = scmp.ne.s32.totalorder %s17_s10, %s175_s20  ;;  %p181_p5 = scmp.lt.s32.totalorder %s175_s20, %s175_s20 }
   0xd   :  { %p182_p6 = por %p181_p5, %p180_p4 }
   0xf   :  { %p183_p7 = pnand %p182_p6, %p176_p3 }
  0x11   :  { %186 = shalt.err (!%p183_p7)
}
  0x12   :  { %19 = dma.hbm_to_vmem [thread:$0]  %s303_s0, 128, %s17_s10, [#allocation3]  }
  0x13   :  { %s187_s25 = scalar_lea.hbm %s304_s1, 512 }
  0x14   :  { %p188_p8 = scmp.ne.s32.totalorder %s304_s1, %s187_s25  ;;  %p191_p9 = scmp.lt.u32.totalorder %s187_s25, %s304_s1 }
  0x16   :  { %p193_p10 = pnand %p191_p9, %p188_p8 }
  0x18   :  { %196 = shalt.err (!%p193_p10)
}
  0x19   :  { %s197_s30 = scalar_lea.vmem %s260_s12, 512  ;;  %p202_p12 = scmp.lt.s32.totalorder %s260_s12, %s260_s12 }
  0x1a   :  { %p198_p11 = scmp.ne.s32.totalorder %s260_s12, %s197_s30  ;;  %p203_p13 = scmp.lt.s32.totalorder %s197_s30, %s197_s30 }
  0x1c   :  { %p204_p0 = por %p203_p13, %p202_p12 }
  0x1e   :  { %p205_p1 = pnand %p204_p0, %p198_p11 }
  0x20   :  { %208 = shalt.err (!%p205_p1)
}
  0x21   :  { %s239_s0 = smov 128   ;;  %s240_s3 = smov 8  }
  0x22   :  { %31 = dma.hbm_to_vmem [thread:$0]  %s304_s1, 512, %s260_s12, [#allocation6], %s239_s0, %s239_s0, %s240_s3  }
  0x23   :  { %231 = dma.done.wait [#allocation3], 128  }
  0x24   :  { %232 = vsyncadd [#allocation3], 4294967168 }
  0x25   :  { %233 = dma.done.wait [#allocation6], 512  }
  0x26   :  { %234 = vsyncadd [#allocation6], 4294966784  ;;  %v241_v0 = vmov 0.0|0.0   ;;  %vm242_vm0 = vmmov 0   ;;  %v243_v1 = vmov 0.0   ;;  %v39_v2 = vld [vmem:[#allocation5] sm:$0xff] }
  0x27   :  { %151 = vmatprep.subr.bf16.mxu0 %v241_v0  ;;  %148 = vmatprep.mubr.msk.f32.mxu0 %vm242_vm0, %v243_v1  ;;  %v40_v3 = vld [vmem:[#allocation5 + $0x8] sm:$0xff]  ;;  %v41_v4 = vld [vmem:[#allocation5 + $0x10] sm:$0xff]  ;;  %v42_v6 = vld [vmem:[#allocation5 + $0x18] sm:$0xff]  ;;  %vm43_vm1 = vcmask 261120   ;;  %s244_s1 = smov [#allocation7]  }
  0x28   :  { %v152_v5 = vpack.c.bf16 %v40_v3, %v39_v2  ;;  %v155_v7 = vpack.c.bf16 %v42_v6, %v41_v4  ;;  %v38_v8 = vld [vmem:[#allocation2] sm:$0xff]  ;;  %s124_s6 = sshll.u32 %s244_s1, 4  ;;  %s125_s6 = int_to_ptr.vmem [resolvable:$true] %s124_s6 }
  0x29   :  { %s209_s7 = scalar_lea.vmem %s125_s6, 128  ;;  %p214_p3 = scmp.lt.s32.totalorder %s125_s6, %s125_s6 }
  0x2a   :  { %153 = vmatpush3.bf16.msra.mxu0 %v152_v5  ;;  %p210_p2 = scmp.ne.s32.totalorder %s125_s6, %s209_s7  ;;  %p215_p4 = scmp.lt.s32.totalorder %s209_s7, %s209_s7 }
  0x2b   :  { %154 = vmatprep.subr.bf16.mxu0 %v241_v0 }
  0x2c   :  { %p216_p5 = por %p215_p4, %p214_p3 }
  0x2e   :  { %156 = vmatpush3.bf16.msra.mxu0 %v155_v7  ;;  %p217_p6 = pnand %p216_p5, %p210_p2 }
  0x31   :  { %149 = vmatmul.mubr.msk.f32.vlgmr.msra.gmra.mrb[0].mxu0 %vm43_vm1, %v38_v8 }
 0x104   :  { %v113_v9 = vpop.f32.mrb[0].mxu0 }
 0x105   :  { %117 = vst [vmem:[#allocation7] sm:$0xff] %v113_v9  ;;  %v150_v10 = vpop.f32.mrb[1].mxu0 }
 0x106   :  { %220 = shalt.err (!%p217_p6)
}
 0x107   :  { %s221_s10 = scalar_lea.hbm %s305_s2, 128 }
 0x108   :  { %p222_p7 = scmp.ne.s32.totalorder %s305_s2, %s221_s10  ;;  %p225_p8 = scmp.lt.u32.totalorder %s221_s10, %s305_s2 }
 0x10a   :  { %p227_p9 = pnand %p225_p8, %p222_p7 }
 0x10c   :  { %230 = shalt.err (!%p227_p9)
}
 0x10d   :  { %127 = dma.vmem_to_hbm [thread:$0]  %s125_s6, 128, %s305_s2, [#allocation4]  }
 0x10e   :  { %235 = dma.done.wait [#allocation4], 128  }
 0x10f   :  { %236 = vsyncadd [#allocation4], 4294967168 }
 0x110   :  { %131 = vsyncpa [#allocation3], 1 }
 0x111   :  { %132 = vsyncpa [#allocation6], 1 }
 0x112   :  { %133 = vsyncpa [#allocation4], 1 }

</bundles_post_ra>
